<compile_context>
chip_gen: v7x
topology: tpu7x:2x2x1
jax: 0.10.0
libtpu: 0.0.40
codegen_flags: <defaults>
</compile_context>

<pallas_src>
import functools

import jax
import jax.numpy as jnp
from jax.experimental import pallas as pl
from jax.experimental.pallas import tpu as pltpu


# ---------------------------------------------------------------------------
# Parameter preparation — run ONCE at init time, not per forward call.
# ---------------------------------------------------------------------------
def prepare_qkv_params(wq, bq, wk, bk, wv, bv, *, mxu_dtype=jnp.bfloat16):
    """Fuse q/k/v Linear params into one (E, 3H) weight and (1, 3H) bias.

    The 1/sqrt(head_size) scale is folded into the query weight/bias (free at
    run time).  Weights are stored in the MXU operand dtype; bias stays f32
    (it is added to the f32 MXU accumulator).
    """
    H = wq.shape[1]
    scale = float(H) ** -0.5
    w_qkv = jnp.concatenate([wq * scale, wk, wv], axis=1).astype(mxu_dtype)   # (E, 3H)
    b_qkv = jnp.concatenate([bq * scale, bk, bv], axis=1).astype(jnp.float32)  # (1, 3H)
    return w_qkv, b_qkv


# ---------------------------------------------------------------------------
# Small helpers.
# ---------------------------------------------------------------------------
def _vmem_capacity_bytes():
    try:
        return int(pltpu.get_tpu_info().vmem_capacity_bytes)
    except Exception:            # conservative fallback: v7x per-TensorCore VMEM
        return 64 * 2 ** 20


def _pick_tile(n, preferred):
    """Largest multiple-of-8 divisor of n that is <= preferred (else n itself)."""
    if n <= preferred:
        return n
    start = preferred - preferred % 8
    for t in range(start, 7, -8):
        if n % t == 0:
            return t
    return n


def _pick_batch_block(B, S, per_b_bytes, budget, target_rows=256):
    """Smallest divisor of B reaching the MXU M-tile row target, within budget."""
    best = 1
    for bt in range(1, B + 1):
        if B % bt:
            continue
        if bt * per_b_bytes > budget and bt > 1:
            break
        best = bt
        if bt * S >= target_rows:
            break
    return best


# ---------------------------------------------------------------------------
# Monolithic single-pass kernel (used when the (S,S) working set fits VMEM).
# ---------------------------------------------------------------------------
def _fused_attention_kernel(x_ref, w_ref, b_ref, o_ref, *, head_size, mxu_dtype):
    bt, s, e = x_ref.shape
    h = head_size

    # In-kernel cast: avoids a separate XLA pre-cast read+write of x in HBM.
    x2d = x_ref[...].reshape(bt * s, e).astype(mxu_dtype)
    w = w_ref[...]                      # (E, 3H), resident (constant index_map)
    b = b_ref[...]                      # (1, 3H), f32

    # Fused QKV projection over bt*s rows: one wide MXU matmul, f32 accumulation.
    qkv = jnp.dot(x2d, w, preferred_element_type=jnp.float32) + b
    qkv = qkv.reshape(bt, s, 3 * h)
    q = qkv[..., :h].astype(mxu_dtype)          # scale already folded into W_q/b_q
    k = qkv[..., h:2 * h].astype(mxu_dtype)
    v = qkv[..., 2 * h:].astype(mxu_dtype)

    # Scores: contract the last dims directly (no materialized k transpose).
    s_qk = jnp.einsum('bqd,bkd->bqk', q, k,
                      preferred_element_type=jnp.float32)           # (bt,S,S) f32

    # Numerically-stable softmax.  exp runs in mxu_dtype (bf16 halves EUP time on
    # v6e/v7x and yields p already in the MXU operand dtype).  Pass
    # mxu_dtype=float32 for v5e, which has no bf16 EUP/VPU.
    s_qk = s_qk - jnp.max(s_qk, axis=-1, keepdims=True)
    p = jnp.exp(s_qk.astype(mxu_dtype))
    l = jnp.sum(p, axis=-1, keepdims=True, dtype=jnp.float32)       # row sums, f32

    # Normalize AFTER the PV matmul: S*H multiplies instead of S*S.
    out = jnp.einsum('bqk,bkd->bqd', p, v,
                     preferred_element_type=jnp.float32)            # (bt,S,H) f32
    out = out * pl.reciprocal(l, approx=True)

    o_ref[...] = out.astype(o_ref.dtype)


def _fused_attention(x, w_qkv, b_qkv, head_size, bt, vmem_limit):
    B, S, E = x.shape
    H = head_size
    mxu_dtype = w_qkv.dtype

    kernel = functools.partial(_fused_attention_kernel,
                               head_size=H, mxu_dtype=mxu_dtype)

    return pl.pallas_call(
        kernel,
        out_shape=jax.ShapeDtypeStruct((B, S, H), x.dtype),
        grid_spec=pltpu.PrefetchScalarGridSpec(
            num_scalar_prefetch=0,
            grid=(B // bt,),
            in_specs=[
                pl.BlockSpec((bt, S, E), lambda b: (b, 0, 0)),       # x (f32 in HBM)
                pl.BlockSpec((E, 3 * H), lambda b: (0, 0)),          # fused W_qkv
                pl.BlockSpec((1, 3 * H), lambda b: (0, 0)),          # fused bias
            ],
            out_specs=pl.BlockSpec((bt, S, H), lambda b: (b, 0, 0)),  # unpadded out
        ),
        compiler_params=pltpu.CompilerParams(
            dimension_semantics=("parallel",),
            vmem_limit_bytes=vmem_limit),
    )(x, w_qkv, b_qkv)


# ---------------------------------------------------------------------------
# Flash-style path for long sequences: fused QKV projection kernel +
# online-softmax attention kernel tiled over (batch, Sq, Skv).
# ---------------------------------------------------------------------------
def _qkv_proj_kernel(x_ref, w_ref, b_ref, q_ref, k_ref, v_ref, *, head_size, mxu_dtype):
    h = head_size
    x = x_ref[...].astype(mxu_dtype)
    qkv = jnp.dot(x, w_ref[...], preferred_element_type=jnp.float32) + b_ref[...]
    q_ref[...] = qkv[:, :h].astype(q_ref.dtype)
    k_ref[...] = qkv[:, h:2 * h].astype(k_ref.dtype)
    v_ref[...] = qkv[:, 2 * h:].astype(v_ref.dtype)


def _qkv_projection(x, w_qkv, b_qkv, head_size, vmem_limit):
    B, S, E = x.shape
    H = head_size
    mxu_dtype = w_qkv.dtype
    BS = B * S
    tm = _pick_tile(BS, 512)
    x2d = x.reshape(BS, E)

    kernel = functools.partial(_qkv_proj_kernel, head_size=H, mxu_dtype=mxu_dtype)
    q, k, v = pl.pallas_call(
        kernel,
        out_shape=tuple(jax.ShapeDtypeStruct((BS, H), mxu_dtype) for _ in range(3)),
        grid_spec=pltpu.PrefetchScalarGridSpec(
            num_scalar_prefetch=0,
            grid=(BS // tm,),
            in_specs=[
                pl.BlockSpec((tm, E), lambda i: (i, 0)),
                pl.BlockSpec((E, 3 * H), lambda i: (0, 0)),
                pl.BlockSpec((1, 3 * H), lambda i: (0, 0)),
            ],
            out_specs=tuple(pl.BlockSpec((tm, H), lambda i: (i, 0)) for _ in range(3)),
        ),
        compiler_params=pltpu.CompilerParams(
            dimension_semantics=("parallel",),
            vmem_limit_bytes=vmem_limit),
    )(x2d, w_qkv, b_qkv)
    return q.reshape(B, S, H), k.reshape(B, S, H), v.reshape(B, S, H)


def _flash_attention_kernel(q_ref, k_ref, v_ref, o_ref, m_sc, l_sc, acc_sc):
    ki = pl.program_id(2)

    @pl.when(ki == 0)
    def _():
        m_sc[...] = jnp.full(m_sc.shape, -jnp.inf, m_sc.dtype)
        l_sc[...] = jnp.zeros(l_sc.shape, l_sc.dtype)
        acc_sc[...] = jnp.zeros(acc_sc.shape, acc_sc.dtype)

    s = jnp.einsum('bqd,bkd->bqk', q_ref[...], k_ref[...],
                   preferred_element_type=jnp.float32)               # (1,tq,tkv) f32
    m_new = jnp.maximum(m_sc[...], jnp.max(s, axis=-1, keepdims=True))
    alpha = jnp.exp(m_sc[...] - m_new)
    p = jnp.exp(s - m_new)
    l_sc[...] = alpha * l_sc[...] + jnp.sum(p, axis=-1, keepdims=True)
    acc_sc[...] = alpha * acc_sc[...] + jnp.einsum(
        'bqk,bkd->bqd', p.astype(v_ref.dtype), v_ref[...],
        preferred_element_type=jnp.float32)
    m_sc[...] = m_new

    @pl.when(ki == pl.num_programs(2) - 1)
    def _():
        o_ref[...] = (acc_sc[...] *
                      pl.reciprocal(l_sc[...], approx=True)).astype(o_ref.dtype)


def _flash_attention(q, k, v, out_dtype, tq, tkv, vmem_limit):
    B, S, H = q.shape
    return pl.pallas_call(
        _flash_attention_kernel,
        out_shape=jax.ShapeDtypeStruct((B, S, H), out_dtype),
        grid_spec=pltpu.PrefetchScalarGridSpec(
            num_scalar_prefetch=0,
            grid=(B, S // tq, S // tkv),
            in_specs=[
                pl.BlockSpec((1, tq, H), lambda b, qi, ki: (b, qi, 0)),
                pl.BlockSpec((1, tkv, H), lambda b, qi, ki: (b, ki, 0)),
                pl.BlockSpec((1, tkv, H), lambda b, qi, ki: (b, ki, 0)),
            ],
            out_specs=pl.BlockSpec((1, tq, H), lambda b, qi, ki: (b, qi, 0)),
            scratch_shapes=[
                pltpu.VMEM((1, tq, 1), jnp.float32),   # running max m
                pltpu.VMEM((1, tq, 1), jnp.float32),   # running sum l
                pltpu.VMEM((1, tq, H), jnp.float32),   # output accumulator
            ],
        ),
        compiler_params=pltpu.CompilerParams(
            dimension_semantics=("parallel", "parallel", "arbitrary"),
            vmem_limit_bytes=vmem_limit),
    )(q, k, v)


# ---------------------------------------------------------------------------
# Public forward: dispatches between the monolithic and flash-tiled paths.
# ---------------------------------------------------------------------------
def attention_base(x, w_qkv, b_qkv, head_size, *, force_flash=False):
    """AttentionBase forward.  x: (B, C, n_embed) f32; returns (B, C, head_size)."""
    B, S, E = x.shape
    H = head_size
    mxu_dtype = w_qkv.dtype
    isz = jnp.dtype(mxu_dtype).itemsize
    xsz = jnp.dtype(x.dtype).itemsize

    vmem_cap = _vmem_capacity_bytes()
    budget = int(0.75 * vmem_cap)   # generation-aware: ~96 MiB on v5e/v6e, ~48 MiB on v7x

    w_bytes = E * 3 * H * isz + 3 * H * 4
    # Monolithic per-batch-element working set: double-buffered x/out blocks,
    # f32 qkv + scores + PV accumulator, mxu_dtype softmax probabilities.
    per_b = (2 * S * E * xsz + S * 3 * H * 4 + S * S * (4 + isz)
             + S * H * 4 + 2 * S * H * xsz)

    use_flash = force_flash or (w_bytes + per_b > budget // 2)

    if not use_flash:
        bt = _pick_batch_block(B, S, per_b, budget // 2)
        vmem_limit = int(min(budget, max(16 * 2 ** 20, 2 * (w_bytes + bt * per_b))))
        return _fused_attention(x, w_qkv, b_qkv, H, bt, vmem_limit)

    # Flash path: projection kernel then online-softmax attention kernel.
    tq = _pick_tile(S, 256)
    tkv = _pick_tile(S, 512)

    tm = _pick_tile(B * S, 512)
    proj_est = w_bytes + 2 * tm * (E * xsz + 3 * H * isz)
    proj_limit = int(min(budget, max(16 * 2 ** 20, 2 * proj_est)))
    q, k, v = _qkv_projection(x, w_qkv, b_qkv, H, proj_limit)

    flash_est = (2 * (tq + 2 * tkv) * H * isz + 2 * tq * H * xsz
                 + 2 * tq * tkv * 4 + tq * (H + 2) * 4)
    flash_limit = int(min(budget, max(16 * 2 ** 20, 2 * flash_est)))
    return _flash_attention(q, k, v, x.dtype, tq, tkv, flash_limit)


# ---------------------------------------------------------------------------
# Pure-JAX reference (mirrors the torch module exactly).
# ---------------------------------------------------------------------------
def reference(x, wq, bq, wk, bk, wv, bv):
    H = wq.shape[1]
    q = x @ wq + bq
    k = x @ wk + bk
    v = x @ wv + bv
    w = (q @ jnp.swapaxes(k, -2, -1)) * H ** (-0.5)
    w = jax.nn.softmax(w, axis=-1)
    return w @ v


if __name__ == "__main__":
    # Small shapes consistent with the module's (B, C, n_embed) convention.
    B, S, E, H = 2, 8, 32, 16

    key = jax.random.PRNGKey(0)
    kx, kwq, kbq, kwk, kbk, kwv, kbv = jax.random.split(key, 7)

    x = jax.random.normal(kx, (B, S, E), dtype=jnp.float32)

    # Deterministic param init mimicking torch.nn.Linear's U(-1/sqrt(E), 1/sqrt(E)).
    bound = 1.0 / (E ** 0.5)

    def init_w(k):  # stored as (E, H) == transpose of torch's (H, E)
        return jax.random.uniform(k, (E, H), jnp.float32, -bound, bound)

    def init_b(k):
        return jax.random.uniform(k, (1, H), jnp.float32, -bound, bound)

    wq, bq = init_w(kwq), init_b(kbq)
    wk, bk = init_w(kwk), init_b(kbk)
    wv, bv = init_w(kwv), init_b(kbv)

    ref = reference(x, wq, bq, wk, bk, wv, bv)

    # --- f32 MXU path (v5e-safe: all elementwise/EUP work stays f32). ---
    # Note: pl.reciprocal(approx=True) normalizes softmax rows to ~1e-3 relative
    # accuracy — a deliberate, documented deviation from exact softmax.
    w32, b32 = prepare_qkv_params(wq, bq, wk, bk, wv, bv, mxu_dtype=jnp.float32)
    out_f32 = jax.block_until_ready(attention_base(x, w32, b32, H))
    assert out_f32.shape == (B, S, H) and out_f32.dtype == x.dtype
    assert jnp.allclose(out_f32, ref, atol=1e-2, rtol=1e-2), "f32-path mismatch"

    # --- bf16 MXU path (fast path on v6e/v7x: bf16 MXU operands + bf16 exp). ---
    wbf, bbf = prepare_qkv_params(wq, bq, wk, bk, wv, bv, mxu_dtype=jnp.bfloat16)
    out_bf16 = jax.block_until_ready(attention_base(x, wbf, bbf, H))
    assert out_bf16.shape == (B, S, H)
    assert jnp.allclose(out_bf16, ref, atol=5e-2, rtol=5e-2), "bf16-path mismatch"

    # --- Flash-tiled path (what large-S / v7x uses), forced here for validation. ---
    out_flash = jax.block_until_ready(attention_base(x, wbf, bbf, H, force_flash=True))
    assert out_flash.shape == (B, S, H)
    assert jnp.allclose(out_flash, ref, atol=5e-2, rtol=5e-2), "flash-path mismatch"

    print("KERNEL_OK")
</pallas_src>

<mosaic_0001>
module attributes {stable_mosaic.version = 11 : i64} {
  func.func @_fused_attention_kernel(%arg0: i32, %arg1: memref<2x8x32xf32, #tpu.memory_space<vmem>>, %arg2: memref<32x48xf32, #tpu.memory_space<vmem>>, %arg3: memref<1x48xf32, #tpu.memory_space<vmem>>, %arg4: memref<2x8x16xf32, #tpu.memory_space<vmem>>) attributes {dimension_semantics = [#tpu.dimension_semantics<parallel>], iteration_bounds = array<i64: 1>, scalar_prefetch = 0 : i64, scratch_operands = 0 : i64, tpu.core_type = #tpu.core_type<tc>, window_params = [{transform_indices = @transform_0, window_bounds = array<i64: 2, 8, 32>}, {pipeline_mode = #tpu.pipeline_mode<synchronous>, transform_indices = @transform_1, window_bounds = array<i64: 32, 48>}, {pipeline_mode = #tpu.pipeline_mode<synchronous>, transform_indices = @transform_2, window_bounds = array<i64: 1, 48>}, {transform_indices = @transform_3, window_bounds = array<i64: 2, 8, 16>}]} {
    %c0 = arith.constant 0 : index
    %c0_0 = arith.constant 0 : index
    %c0_1 = arith.constant 0 : index
    %0 = vector.load %arg1[%c0, %c0_0, %c0_1] : memref<2x8x32xf32, #tpu.memory_space<vmem>>, vector<2x8x32xf32>
    %1 = vector.shape_cast %0 : vector<2x8x32xf32> to vector<16x32xf32>
    %c0_2 = arith.constant 0 : index
    %c0_3 = arith.constant 0 : index
    %2 = vector.load %arg2[%c0_2, %c0_3] : memref<32x48xf32, #tpu.memory_space<vmem>>, vector<32x48xf32>
    %c0_4 = arith.constant 0 : index
    %c0_5 = arith.constant 0 : index
    %3 = vector.load %arg3[%c0_4, %c0_5] : memref<1x48xf32, #tpu.memory_space<vmem>>, vector<1x48xf32>
    %cst = arith.constant dense<0.000000e+00> : vector<16x48xf32>
    %4 = tpu.matmul %1, %2, %cst {dimension_numbers = #tpu.dot_dimension_numbers<[1], [0], [0], [1], [0, 0, 1, 1], [], []>} : vector<16x32xf32>, vector<32x48xf32>, vector<16x48xf32> -> vector<16x48xf32>
    %5 = vector.broadcast %3 : vector<1x48xf32> to vector<16x48xf32>
    %6 = arith.addf %4, %5 : vector<16x48xf32>
    %7 = vector.shape_cast %6 : vector<16x48xf32> to vector<2x8x48xf32>
    %8 = vector.extract_strided_slice %7 {offsets = [0, 0, 0], sizes = [2, 8, 16], strides = [1, 1, 1]} : vector<2x8x48xf32> to vector<2x8x16xf32>
    %9 = vector.extract_strided_slice %7 {offsets = [0, 0, 16], sizes = [2, 8, 16], strides = [1, 1, 1]} : vector<2x8x48xf32> to vector<2x8x16xf32>
    %10 = vector.extract_strided_slice %7 {offsets = [0, 0, 32], sizes = [2, 8, 16], strides = [1, 1, 1]} : vector<2x8x48xf32> to vector<2x8x16xf32>
    "tpu.trace_start"() <{level = 10 : i32, message = "bqd,bkd->bqk"}> : () -> ()
    %cst_6 = arith.constant dense<0.000000e+00> : vector<2x8x8xf32>
    %11 = tpu.matmul %8, %9, %cst_6 {dimension_numbers = #tpu.dot_dimension_numbers<[2], [2], [1], [1], [0, 0, 0, 1, 1, 1], [0], [0]>} : vector<2x8x16xf32>, vector<2x8x16xf32>, vector<2x8x8xf32> -> vector<2x8x8xf32>
    "tpu.trace_stop"() : () -> ()
    %cst_7 = arith.constant dense<0xFF800000> : vector<2x8xf32>
    %12 = vector.multi_reduction <maximumf>, %11, %cst_7 [2] : vector<2x8x8xf32> to vector<2x8xf32>
    %13 = vector.shape_cast %12 : vector<2x8xf32> to vector<2x8x1xf32>
    %14 = vector.broadcast %13 : vector<2x8x1xf32> to vector<2x8x8xf32>
    %15 = arith.subf %11, %14 : vector<2x8x8xf32>
    %16 = math.exp %15 : vector<2x8x8xf32>
    %cst_8 = arith.constant dense<0.000000e+00> : vector<2x8xf32>
    %17 = vector.multi_reduction <add>, %16, %cst_8 [2] : vector<2x8x8xf32> to vector<2x8xf32>
    %18 = vector.shape_cast %17 : vector<2x8xf32> to vector<2x8x1xf32>
    "tpu.trace_start"() <{level = 10 : i32, message = "bqk,bkd->bqd"}> : () -> ()
    %cst_9 = arith.constant dense<0.000000e+00> : vector<2x8x16xf32>
    %19 = tpu.matmul %16, %10, %cst_9 {dimension_numbers = #tpu.dot_dimension_numbers<[2], [1], [1], [2], [0, 0, 0, 1, 1, 2], [0], [0]>} : vector<2x8x8xf32>, vector<2x8x16xf32>, vector<2x8x16xf32> -> vector<2x8x16xf32>
    "tpu.trace_stop"() : () -> ()
    %20 = tpu.reciprocal %18 {approx = true} : vector<2x8x1xf32> -> vector<2x8x1xf32>
    %21 = vector.broadcast %20 : vector<2x8x1xf32> to vector<2x8x16xf32>
    %22 = arith.mulf %19, %21 : vector<2x8x16xf32>
    %c0_10 = arith.constant 0 : index
    %c0_11 = arith.constant 0 : index
    %c0_12 = arith.constant 0 : index
    %23 = vector.load %arg4[%c0_10, %c0_11, %c0_12] : memref<2x8x16xf32, #tpu.memory_space<vmem>>, vector<2x8x16xf32>
    tpu.vector_store %arg4[%c0_10, %c0_11, %c0_12], %22 {strides = array<i32>} : memref<2x8x16xf32, #tpu.memory_space<vmem>>, vector<2x8x16xf32>,
    return
  }
  func.func @transform_0(%arg0: i32) -> (i32, i32, i32) {
    %c0_i32 = arith.constant 0 : i32
    %c0_i32_0 = arith.constant 0 : i32
    %c0_i32_1 = arith.constant 0 : i32
    return %arg0, %c0_i32, %c0_i32_0 : i32, i32, i32
  }
  func.func @transform_1(%arg0: i32) -> (i32, i32) {
    %c0_i32 = arith.constant 0 : i32
    %c0_i32_0 = arith.constant 0 : i32
    %c0_i32_1 = arith.constant 0 : i32
    return %c0_i32, %c0_i32_0 : i32, i32
  }
  func.func @transform_2(%arg0: i32) -> (i32, i32) {
    %c0_i32 = arith.constant 0 : i32
    %c0_i32_0 = arith.constant 0 : i32
    %c0_i32_1 = arith.constant 0 : i32
    return %c0_i32, %c0_i32_0 : i32, i32
  }
  func.func @transform_3(%arg0: i32) -> (i32, i32, i32) {
    %c0_i32 = arith.constant 0 : i32
    %c0_i32_0 = arith.constant 0 : i32
    %c0_i32_1 = arith.constant 0 : i32
    return %arg0, %c0_i32, %c0_i32_0 : i32, i32, i32
  }
}

</mosaic_0001>

<bundles_post_ra>
// kernel: tpu_custom_call.1
= control target key start
LH: loop header
LB: loop body
LE: loop exit
PB: predicated region body
PF: predicated region fallthrough
CT: control target
= control target key end

     0   :  { %8 = vsyncpa [#allocation3], 0  ;;  %s732_s0 = inlined_call_operand.hbm [shape: f32[2,8,32], index: 0, kind: input, shape index: {}]   ;;  %s733_s1 = inlined_call_operand.hbm [shape: f32[32,48], index: 1, kind: input, shape index: {}]   ;;  %s734_s2 = inlined_call_operand.vmem [shape: f32[1,48], index: 2, kind: input, shape index: {}]   ;;  %s735_s3 = inlined_call_operand.hbm [shape: f32[2,8,16], index: 3, kind: output, shape index: {}]  }
   0x1   :  { %9 = vsyncpa [#allocation6], 0 }
   0x2   :  { %10 = vsyncpa [#allocation4], 0  ;;  %s639_s12 = smov [#allocation2]   ;;  %s567_s16 = scalar_lea.hbm %s732_s0, 256 }
   0x3   :  { %s16_s13 = sshll.u32 %s639_s12, 4  ;;  %p568_p0 = scmp.ne.s32.totalorder %s732_s0, %s567_s16  ;;  %s17_s13 = int_to_ptr.vmem [resolvable:$true] %s16_s13 }
   0x4   :  { %p571_p1 = scmp.lt.u32.totalorder %s567_s16, %s732_s0 }
   0x6   :  { %p573_p2 = pnand %p571_p1, %p568_p0 }
   0x8   :  { %576 = shalt.err (!%p573_p2)
}
   0x9   :  { %s577_s21 = scalar_lea.vmem %s17_s13, 256  ;;  %p582_p4 = scmp.lt.s32.totalorder %s17_s13, %s17_s13 }
   0xa   :  { %p578_p3 = scmp.ne.s32.totalorder %s17_s13, %s577_s21  ;;  %p583_p5 = scmp.lt.s32.totalorder %s577_s21, %s577_s21 }
   0xc   :  { %p584_p6 = por %p583_p5, %p582_p4 }
   0xe   :  { %p585_p7 = pnand %p584_p6, %p578_p3 }
  0x10   :  { %588 = shalt.err (!%p585_p7)
}
  0x11   :  { %s640_s22 = smov 128   ;;  %s641_s23 = smov 8  }
  0x12   :  { %22 = dma.hbm_to_vmem [thread:$0]  %s732_s0, 256, %s17_s13, [#allocation3], %s640_s22, %s640_s22, %s641_s23  }
  0x13   :  { %s642_s26 = smov [#allocation5]   ;;  %s589_s30 = scalar_lea.hbm %s733_s1, 512 }
  0x14   :  { %s28_s27 = sshll.u32 %s642_s26, 4  ;;  %p590_p8 = scmp.ne.s32.totalorder %s733_s1, %s589_s30  ;;  %s29_s27 = int_to_ptr.vmem [resolvable:$true] %s28_s27 }
  0x15   :  { %p593_p9 = scmp.lt.u32.totalorder %s589_s30, %s733_s1 }
  0x17   :  { %p595_p10 = pnand %p593_p9, %p590_p8 }
  0x19   :  { %598 = shalt.err (!%p595_p10)
}
  0x1a   :  { %s599_s8 = scalar_lea.vmem %s29_s27, 512  ;;  %p604_p12 = scmp.lt.s32.totalorder %s29_s27, %s29_s27 }
  0x1b   :  { %p600_p11 = scmp.ne.s32.totalorder %s29_s27, %s599_s8  ;;  %p605_p13 = scmp.lt.s32.totalorder %s599_s8, %s599_s8 }
  0x1d   :  { %p606_p0 = por %p605_p13, %p604_p12 }
  0x1f   :  { %p607_p1 = pnand %p606_p0, %p600_p11 }
  0x21   :  { %610 = shalt.err (!%p607_p1)
}
  0x22   :  { %34 = dma.hbm_to_vmem [thread:$0]  %s733_s1, 512, %s29_s27, [#allocation6], %s640_s22, %s640_s22, %s641_s23  }
  0x23   :  { %633 = dma.done.wait [#allocation3], 256  }
  0x24   :  { %634 = vsyncadd [#allocation3], 4294967040 }
  0x25   :  { %635 = dma.done.wait [#allocation6], 512  }
  0x26   :  { %636 = vsyncadd [#allocation6], 4294966784  ;;  %vm56_vm0 = vcmask 261120   ;;  %v45_v0 = vld [vmem:[#allocation5] sm:$0xff]  ;;  %v46_v1 = vld [vmem:[#allocation5 + $0x8] sm:$0xff]  ;;  %v643_v8 = vmov 0.0  }
  0x27   :  { %v47_v2 = vld [vmem:[#allocation5 + $0x10] sm:$0xff]  ;;  %v542_v3 = vpack.c.bf16 %v46_v1, %v45_v0  ;;  %v48_v4 = vld [vmem:[#allocation5 + $0x18] sm:$0xff]  ;;  %522 = vmatprep.subr.mxu1 %v643_v8  ;;  %vm644_vm1 = vmmov 0   ;;  %s645_s11 = smov 112   ;;  %s646_s12 = smov 96   ;;  %vm141_vm2 = vcmask 130048  }
  0x28   :  { %v43_v5 = vld [vmem:[#allocation2] sm:$0xff]  ;;  %v546_v6 = vpack.c.bf16 %v48_v4, %v47_v2  ;;  %v44_v7 = vld [vmem:[#allocation2 + $0x8] sm:$0xff]  ;;  %524 = vmatprep.mubr.msk.f32.mxu1 %vm644_vm1, %v643_v8  ;;  %vm293_vm3 = vcmask 64512  }
  0x29   :  { %519 = vmatprep.mubr.msk.f32.mxu0 %vm56_vm0, %v43_v5  ;;  %543 = vmatprep.subr.bf16.mxu0 %v542_v3  ;;  %v488_v9 = vld [vmem:[%s734_s2] ss:$0 sm:$0xff]  ;;  %s647_s2 = smov [#allocation7]  }
  0x2a   :  { %545 = vmatpush3.bf16.msra.mxu0 %v542_v3  ;;  %s475_s13 = sshll.u32 %s647_s2, 4  ;;  %s476_s13 = int_to_ptr.vmem [resolvable:$true] %s475_s13 }
  0x2b   :  { %547 = vmatprep.subr.bf16.mxu0 %v546_v6  ;;  %s611_s14 = scalar_lea.vmem %s476_s13, 256  ;;  %p616_p3 = scmp.lt.s32.totalorder %s476_s13, %s476_s13 }
  0x2c   :  { %p612_p2 = scmp.ne.s32.totalorder %s476_s13, %s611_s14  ;;  %p617_p4 = scmp.lt.s32.totalorder %s611_s14, %s611_s14 }
  0x2e   :  { %549 = vmatpush3.bf16.msra.mxu0 %v546_v6  ;;  %p618_p5 = por %p617_p4, %p616_p3 }
  0x2f   :  { %532 = vmatprep.subr.mxu0 %v643_v8 }
  0x30   :  { %p619_p6 = pnand %p618_p5, %p612_p2 }
  0x31   :  { %520 = vmatmul.mubr.msk.f32.vlgmr.msra.gmra.mrb[0].mxu0 %vm56_vm0, %v44_v7 }
  0x32   :  { %534 = vmatprep.mubr.msk.f32.mxu0 %vm644_vm1, %v643_v8 }
 0x104   :  { %v521_v10 = vpop.f32.mrb[0].mxu0 }
 0x105   :  { %v129_v11 = vpop.f32.mrb[1].mxu0  ;;  %v135_v13 = vadd.f32 %v521_v10, %v488_v9 }
 0x106   :  { %v130_v12 = vadd.f32 %v488_v9, %v129_v11 }
 0x108   :  { %139 = vrot.lane.b32.xlu0 %v130_v12, %s645_s11 }
 0x10c   :  { %217 = vrot.lane.b32.xlu0 %v135_v13, %s645_s11 }
 0x110   :  { %312 = vrot.lane.b32.xlu0 %v130_v12, %s646_s12 }
 0x17a   :  { %v140_v14 = vpop.permute.xlu0 %139 }
 0x17b   :  { %523 = vmatpush3.xpose.msk.msra.mxu1 %vm141_vm2, %v140_v14 }
 0x17c   :  { %527 = vmatprep.subr.mxu1 %v643_v8 }
 0x17e   :  { %525 = vmatmul.mubr.msk.f32.vlgmr.msra.gmra.mrb[0].mxu1 %vm141_vm2, %v130_v12  ;;  %v218_v15 = vpop.permute.xlu0 %217 }
 0x17f   :  { %528 = vmatpush3.xpose.msk.msra.mxu1 %vm141_vm2, %v218_v15  ;;  %529 = vmatprep.mubr.msk.f32.mxu1 %vm644_vm1, %v643_v8 }
 0x180   :  { %537 = vmatprep.subr.mxu1 %v643_v8 }
 0x182   :  { %530 = vmatmul.mubr.msk.f32.vlgmr.msra.gmra.mrb[2].mxu1 %vm141_vm2, %v135_v13  ;;  %v313_v16 = vpop.permute.xlu0 %312 }
 0x183   :  { %533 = vmatpush3.msra.mxu0 %v313_v16  ;;  %539 = vmatprep.mubr.msk.f32.mxu1 %vm644_vm1, %v643_v8 }
 0x251   :  { %v212_v17 = vpop.f32.mrb[0].mxu1 }
 0x252   :  { %v526_v18 = vpop.f32.mrb[1].mxu1  ;;  %v294_v19 = vsel %vm293_vm3, %v212_v17, -inf }
 0x253   :  { %295 = vmax.xlane.f32.xlu1 %v294_v19 }
 0x255   :  { %v289_v20 = vpop.f32.mrb[2].mxu1 }
 0x256   :  { %v531_v21 = vpop.f32.mrb[3].mxu1  ;;  %v297_v22 = vsel %vm293_vm3, %v289_v20, -inf }
 0x257   :  { %298 = vmax.xlane.f32.xlu1 %v297_v22 }
 0x268   :  { %388 = vrot.lane.b32.xlu1 %v135_v13, %s646_s12 }
 0x2e0   :  { %v296_v23 = vpop.xlane.xlu1 %295 }
 0x2e1   :  { %v300_v24 = vsub.f32 %v212_v17, %v296_v23 }
 0x2e3   :  { %v302_v25 = vmul.f32 1.442695, %v300_v24 }
 0x2e4   :  { %v299_v26 = vpop.xlane.xlu1 %298 }
 0x2e5   :  { %559 = vpow2.f32 %v302_v25  ;;  %v301_v27 = vsub.f32 %v289_v20, %v299_v26 }
 0x2e7   :  { %v304_v28 = vmul.f32 1.442695, %v301_v27 }
 0x2e8   :  { %v389_v29 = vpop.permute.xlu1 %388 }
 0x2e9   :  { %561 = vpow2.f32 %v304_v28  ;;  %538 = vmatpush3.msra.mxu1 %v389_v29 }
 0x2ef   :  { %v560_v30 = vpop.eup %559 }
 0x2f0   :  { %535 = vmatmul.mubr.msk.f32.vlgmr.msra.gmra.mrb[2].mxu0 %vm293_vm3, %v560_v30  ;;  %v306_v31 = vsel %vm293_vm3, %v560_v30, 0.0 }
 0x2f1   :  { %307 = vadd.xlane.f32.xlu0 %v306_v31 }
 0x2f3   :  { %v562_v32 = vpop.eup %561 }
 0x2f4   :  { %540 = vmatmul.mubr.msk.f32.vlgmr.msra.gmra.mrb[4].mxu1 %vm293_vm3, %v562_v32  ;;  %v309_v33 = vsel %vm293_vm3, %v562_v32, 0.0 }
 0x2f5   :  { %310 = vadd.xlane.f32.xlu1 %v309_v33 }
 0x37e   :  { %v308_v34 = vpop.xlane.xlu0 %307 }
 0x37f   :  { %563 = vrcp.f32 %v308_v34 }
 0x382   :  { %v311_v35 = vpop.xlane.xlu1 %310 }
 0x383   :  { %565 = vrcp.f32 %v311_v35 }
 0x389   :  { %v564_v36 = vpop.eup %563 }
 0x38d   :  { %v566_v40 = vpop.eup %565 }
 0x3c3   :  { %v384_v37 = vpop.f32.mrb[2].mxu0 }
 0x3c4   :  { %v466_v38 = vmul.f32 %v564_v36, %v384_v37  ;;  %v536_v39 = vpop.f32.mrb[3].mxu0 }
 0x3c6   :  { %468 = vst.msk [vmem:[#allocation7] sm:$0xff] %vm141_vm2, %v466_v38 }
 0x3c7   :  { %v460_v41 = vpop.f32.mrb[4].mxu1 }
 0x3c8   :  { %v467_v42 = vmul.f32 %v566_v40, %v460_v41  ;;  %v541_v43 = vpop.f32.mrb[5].mxu1 }
 0x3ca   :  { %469 = vst.msk [vmem:[#allocation7 + $0x8] sm:$0xff] %vm141_vm2, %v467_v42 }
 0x3cb   :  { %622 = shalt.err (!%p619_p6)
}
 0x3cc   :  { %s623_s17 = scalar_lea.hbm %s735_s3, 256 }
 0x3cd   :  { %p624_p7 = scmp.ne.s32.totalorder %s735_s3, %s623_s17  ;;  %p627_p8 = scmp.lt.u32.totalorder %s623_s17, %s735_s3 }
 0x3cf   :  { %p629_p9 = pnand %p627_p8, %p624_p7 }
 0x3d1   :  { %632 = shalt.err (!%p629_p9)
}
 0x3d2   :  { %481 = dma.vmem_to_hbm [thread:$0]  %s476_s13, 256, %s735_s3, [#allocation4], %s640_s22, %s640_s22, %s641_s23  }
 0x3d3   :  { %637 = dma.done.wait [#allocation4], 256  }
 0x3d4   :  { %638 = vsyncadd [#allocation4], 4294967040 }
 0x3d5   :  { %485 = vsyncpa [#allocation3], 1 }
 0x3d6   :  { %486 = vsyncpa [#allocation6], 1 }
 0x3d7   :  { %487 = vsyncpa [#allocation4], 1 }

</bundles_post_ra>
